<compile_context>
chip_gen: v6e
topology: v6e:2x2x1
jax: 0.10.0
libtpu: 0.0.40
codegen_flags: <defaults>
</compile_context>

<pallas_src>
import functools

import jax
import jax.numpy as jnp
from jax.experimental import pallas as pl
from jax.experimental.pallas import tpu as pltpu

_NEG = -1e30  # "minus infinity" for padded / banned vocab entries


def _recip(x, approx):
    # pl.reciprocal only has a Mosaic (TPU) lowering; use plain divide elsewhere.
    if approx:
        return pl.reciprocal(x, approx=True)
    return 1.0 / x


def _gumbel_softmax_body(u, x, out_ref, *, V, c, hard, approx):
    """u: (rows, Vpad) f32 uniform in [0,1).  x: (rows, Vpad) f32 table block.

    c is None  -> specialized noise_scale == tau path: x holds exp((logits-max)/tau)
                  (padded lanes 0); softmax numerator = x * 1/(-log u).
    c is float -> general path: x holds logits/tau (padded lanes -1e30);
                  y = x + c * gumbel(u).
    """
    u = jnp.maximum(u, 1e-9)                       # keep log(u) finite
    nlu = jnp.maximum(-jnp.log(u), 1e-7)           # Exp(1) variate, clamped off 0/inf

    if c is None:
        # exp(y) = exp(x/tau) * exp(g) = exp_x / (-log u): 1 log + 1 rcp per element,
        # and no per-row max (stable exp precomputed host-side on the tiny table).
        z = x * _recip(nlu, approx)
        if hard:
            m = jnp.max(z, axis=-1, keepdims=True)
            out = (z == m).astype(jnp.bfloat16)    # ties are measure-zero with noise
        else:
            s = jnp.sum(z, axis=-1, keepdims=True)
            out = (z * _recip(s, approx)).astype(jnp.bfloat16)
    else:
        g = -jnp.log(nlu)
        y = x + c * g
        if hard:
            m = jnp.max(y, axis=-1, keepdims=True)
            out = (y == m).astype(jnp.bfloat16)
        else:
            m = jnp.max(y, axis=-1, keepdims=True)
            e = jnp.exp(y - m)
            s = jnp.sum(e, axis=-1, keepdims=True)
            out = (e * _recip(s, approx)).astype(jnp.bfloat16)

    # Un-pad inside the kernel: output array is (B*S, V), so no external slice pass.
    out_ref[...] = out[:, :V]


def _kernel_hw_prng(seed_ref, table_ref, out_ref, *, rows, vpad, V, c, hard):
    # seed_ref : SMEM i32[1]; table_ref: VMEM (rows, Vpad) f32 resident block.
    pltpu.prng_seed(seed_ref[0] + pl.program_id(0))        # distinct stream per step
    bits = pltpu.bitcast(pltpu.prng_random_bits((rows, vpad)), jnp.uint32)
    mant = (bits >> 9) | jnp.uint32(0x3F800000)            # 1.mantissa in [1, 2)
    u = pltpu.bitcast(mant, jnp.float32) - 1.0             # uniform [0, 1)
    _gumbel_softmax_body(u, table_ref[...], out_ref, V=V, c=c, hard=hard, approx=True)


def _kernel_host_noise(table_ref, u_ref, out_ref, *, V, c, hard):
    # Fallback (interpret / non-TPU): uniforms come in as a regular input block.
    _gumbel_softmax_body(u_ref[...], table_ref[...], out_ref, V=V, c=c, hard=hard,
                         approx=False)


def _pick_block_batch(B, S, Vpad, target_elems=1 << 20):
    """Rows per grid step = Bt*S.  Prefer 16- then 8-aligned rows (dense bf16/f32
    sublanes), >=2 grid steps (v7x megacore), and blocks under ~1M elements."""
    divisors = [d for d in range(1, B + 1) if B % d == 0]

    def fits(d):
        return d * S * Vpad <= target_elems

    for align in (16, 8):
        cands = [d for d in divisors if (d * S) % align == 0 and fits(d)]
        if cands:
            multi = [d for d in cands if d < B]
            return max(multi) if multi else max(cands)
    if fits(B):
        return B                                # single full-extent block (legal)
    aligned = [d for d in divisors if (d * S) % 8 == 0 and d < B]
    if aligned:
        return min(aligned)                     # legality (rows % 8) over VMEM budget
    return B


def suffix_forward(suffix_logits, batch_size, *, tau=1.0, noise_scale=1.0,
                   hard=False, seed=0, bad_words_ids=None):
    """Pallas equivalent of Suffix.forward -> (batch_size, S, V) bfloat16."""
    if suffix_logits.ndim == 3:
        assert suffix_logits.shape[0] == 1
        logits = suffix_logits[0]
    else:
        logits = suffix_logits
    S, V = logits.shape
    B = int(batch_size)
    tau = float(tau)
    noise_scale = float(noise_scale)

    x = logits.astype(jnp.float32)
    if bad_words_ids:
        ids = jnp.asarray(sorted({int(i) for i in bad_words_ids}), dtype=jnp.int32)
        x = x.at[:, ids].set(_NEG)
    x = x * (1.0 / tau)

    c = noise_scale / tau
    if abs(c - 1.0) < 1e-12:                     # default tau == noise_scale config
        table = jnp.exp(x - jnp.max(x, axis=-1, keepdims=True))   # (S, V), in (0, 1]
        pad_val, c_arg = 0.0, None
    else:
        table, pad_val, c_arg = x, _NEG, c

    # Lane-dense vocab padding; padded lanes contribute ~0 probability.
    Vpad = ((V + 127) // 128) * 128
    if Vpad != V:
        table = jnp.pad(table, ((0, 0), (0, Vpad - V)), constant_values=pad_val)

    Bt = _pick_block_batch(B, S, Vpad)
    rows = Bt * S
    grid = (B // Bt,)

    # Bt replicas (never B) of the tiny per-position table; constant block index so
    # it is DMA'd once and stays resident in VMEM for every grid step.
    # TODO(synk): replicate from an (S, Vpad) table inside the kernel to drop the
    # Bt-fold VMEM copy; kept host-side to avoid unaligned sublane relayouts.
    table_tiled = jnp.tile(table, (Bt, 1))       # (rows, Vpad) f32

    table_spec = pl.BlockSpec((rows, Vpad), lambda b: (0, 0))
    out_spec = pl.BlockSpec((rows, V), lambda b: (b, 0))      # un-padded output

    on_tpu = jax.default_backend() == "tpu"
    if on_tpu:
        kernel = functools.partial(_kernel_hw_prng, rows=rows, vpad=Vpad,
                                   V=V, c=c_arg, hard=hard)
        in_specs = [pl.BlockSpec(memory_space=pltpu.MemorySpace.SMEM),  # [seed]
                    table_spec]
        operands = (jnp.array([seed], dtype=jnp.int32), table_tiled)
    else:
        # Interpret / non-TPU fallback: TPU hardware PRNG has no lowering here, so
        # draw the uniforms with jax.random and stream them through the kernel.
        u = jax.random.uniform(jax.random.PRNGKey(seed), (B * S, Vpad),
                               dtype=jnp.float32)
        kernel = functools.partial(_kernel_host_noise, V=V, c=c_arg, hard=hard)
        in_specs = [table_spec,
                    pl.BlockSpec((rows, Vpad), lambda b: (b, 0))]
        operands = (table_tiled, u)

    out2d = pl.pallas_call(
        kernel,
        out_shape=jax.ShapeDtypeStruct((B * S, V), jnp.bfloat16),
        grid=grid,
        in_specs=in_specs,
        out_specs=out_spec,
        compiler_params=pltpu.CompilerParams(
            dimension_semantics=("parallel",),
            vmem_limit_bytes=48 * 1024 * 1024),
    )(*operands)

    return out2d.reshape(B, S, V)


if __name__ == "__main__":
    SUFFIX_LEN = 5       # cfg.suffix_len default
    VOCAB = 2001         # small non-multiple-of-128 stand-in for the 32001 vocab
    BATCH = 2

    key = jax.random.PRNGKey(0)
    # __init__: suffix_logits = 0.001 * rand(1, suffix_len, vocab)
    suffix_logits = 0.001 * jax.random.uniform(
        key, (1, SUFFIX_LEN, VOCAB), dtype=jnp.float32)

    # Default config path (tau == noise_scale -> specialized kernel).
    out = suffix_forward(suffix_logits, BATCH, tau=1.0, noise_scale=1.0,
                         hard=False, seed=0)
    out = jax.block_until_ready(out)
    assert out.shape == (BATCH, SUFFIX_LEN, VOCAB)
    assert out.dtype == jnp.bfloat16
    row_sums = jnp.sum(out.astype(jnp.float32), axis=-1)
    assert bool(jnp.all(jnp.abs(row_sums - 1.0) < 2e-2))
    assert not bool(jnp.all(out[0] == out[1]))   # independent noise per batch row

    # General (noise_scale != tau) path.
    out2 = suffix_forward(suffix_logits, BATCH, tau=2.0, noise_scale=1.0,
                          hard=False, seed=1)
    out2 = jax.block_until_ready(out2)
    assert out2.shape == (BATCH, SUFFIX_LEN, VOCAB) and out2.dtype == jnp.bfloat16
    row_sums2 = jnp.sum(out2.astype(jnp.float32), axis=-1)
    assert bool(jnp.all(jnp.abs(row_sums2 - 1.0) < 2e-2))

    # Hard (one-hot forward value) path.
    # TODO(synk): straight-through gradient (y_hard - sg(y_soft) + y_soft) would
    # need a custom_vjp; only the forward one-hot value is produced here.
    out3 = suffix_forward(suffix_logits, BATCH, tau=1.0, noise_scale=1.0,
                          hard=True, seed=2)
    out3 = jax.block_until_ready(out3)
    assert out3.shape == (BATCH, SUFFIX_LEN, VOCAB) and out3.dtype == jnp.bfloat16
    assert bool(jnp.all(jnp.max(out3.astype(jnp.float32), axis=-1) == 1.0))

    print("KERNEL_OK")
</pallas_src>

<mosaic_0001>
module attributes {stable_mosaic.version = 11 : i64} {
  func.func @_kernel_host_noise(%arg0: i32, %arg1: memref<10x2048xf32, #tpu.memory_space<vmem>>, %arg2: memref<10x2048xf32, #tpu.memory_space<vmem>>, %arg3: memref<10x2001xbf16, #tpu.memory_space<vmem>>) attributes {dimension_semantics = [#tpu.dimension_semantics<parallel>], iteration_bounds = array<i64: 1>, scalar_prefetch = 0 : i64, scratch_operands = 0 : i64, tpu.core_type = #tpu.core_type<tc>, window_params = [{pipeline_mode = #tpu.pipeline_mode<synchronous>, transform_indices = @transform_0, window_bounds = array<i64: 10, 2048>}, {transform_indices = @transform_1, window_bounds = array<i64: 10, 2048>}, {transform_indices = @transform_2, window_bounds = array<i64: 10, 2001>}]} {
    %c0 = arith.constant 0 : index
    %c0_0 = arith.constant 0 : index
    %0 = vector.load %arg2[%c0, %c0_0] : memref<10x2048xf32, #tpu.memory_space<vmem>>, vector<10x2048xf32>
    %c0_1 = arith.constant 0 : index
    %c0_2 = arith.constant 0 : index
    %1 = vector.load %arg1[%c0_1, %c0_2] : memref<10x2048xf32, #tpu.memory_space<vmem>>, vector<10x2048xf32>
    %cst = arith.constant 9.99999971E-10 : f32
    %2 = vector.broadcast %cst : f32 to vector<10x2048xf32>
    %3 = arith.maximumf %0, %2 : vector<10x2048xf32>
    %4 = math.log %3 : vector<10x2048xf32>
    %cst_3 = arith.constant 0.000000e+00 : f32
    %5 = vector.broadcast %cst_3 : f32 to vector<10x2048xf32>
    %6 = arith.subf %5, %4 : vector<10x2048xf32>
    %cst_4 = arith.constant 1.000000e-07 : f32
    %7 = vector.broadcast %cst_4 : f32 to vector<10x2048xf32>
    %8 = arith.maximumf %6, %7 : vector<10x2048xf32>
    %cst_5 = arith.constant 1.000000e+00 : f32
    %9 = vector.broadcast %cst_5 : f32 to vector<10x2048xf32>
    %10 = arith.divf %9, %8 : vector<10x2048xf32>
    %11 = arith.mulf %1, %10 : vector<10x2048xf32>
    %cst_6 = arith.constant dense<0.000000e+00> : vector<10xf32>
    %12 = vector.multi_reduction <add>, %11, %cst_6 [1] : vector<10x2048xf32> to vector<10xf32>
    %13 = vector.shape_cast %12 : vector<10xf32> to vector<10x1xf32>
    %cst_7 = arith.constant 1.000000e+00 : f32
    %14 = vector.broadcast %cst_7 : f32 to vector<10x1xf32>
    %15 = arith.divf %14, %13 : vector<10x1xf32>
    %16 = vector.broadcast %15 : vector<10x1xf32> to vector<10x2048xf32>
    %17 = arith.mulf %11, %16 : vector<10x2048xf32>
    %18 = arith.truncf %17 : vector<10x2048xf32> to vector<10x2048xbf16>
    %19 = vector.extract_strided_slice %18 {offsets = [0, 0], sizes = [10, 2001], strides = [1, 1]} : vector<10x2048xbf16> to vector<10x2001xbf16>
    %c0_8 = arith.constant 0 : index
    %c0_9 = arith.constant 0 : index
    %20 = vector.load %arg3[%c0_8, %c0_9] : memref<10x2001xbf16, #tpu.memory_space<vmem>>, vector<10x2001xbf16>
    tpu.vector_store %arg3[%c0_8, %c0_9], %19 {strides = array<i32>} : memref<10x2001xbf16, #tpu.memory_space<vmem>>, vector<10x2001xbf16>,
    return
  }
  func.func @transform_0(%arg0: i32) -> (i32, i32) {
    %c0_i32 = arith.constant 0 : i32
    %c0_i32_0 = arith.constant 0 : i32
    %c0_i32_1 = arith.constant 0 : i32
    return %c0_i32, %c0_i32_0 : i32, i32
  }
  func.func @transform_1(%arg0: i32) -> (i32, i32) {
    %c0_i32 = arith.constant 0 : i32
    %c0_i32_0 = arith.constant 0 : i32
    return %arg0, %c0_i32 : i32, i32
  }
  func.func @transform_2(%arg0: i32) -> (i32, i32) {
    %c0_i32 = arith.constant 0 : i32
    %c0_i32_0 = arith.constant 0 : i32
    return %arg0, %c0_i32 : i32, i32
  }
}

</mosaic_0001>

<bundles_post_ra>
// kernel: tpu_custom_call.1
= control target key start
LH: loop header
LB: loop body
LE: loop exit
PB: predicated region body
PF: predicated region fallthrough
CT: control target
= control target key end

     0   :  { %7 = vsyncpa [#allocation3], 0  ;;  %s999_s0 = inlined_call_operand.hbm [shape: f32[10,2048], index: 0, kind: input, shape index: {}]   ;;  %s1000_s1 = inlined_call_operand.hbm [shape: f32[10,2048], index: 1, kind: input, shape index: {}]   ;;  %s1001_s2 = inlined_call_operand.hbm [shape: bf16[10,2001], index: 2, kind: output, shape index: {}]  }
   0x1   :  { %8 = vsyncpa [#allocation6], 0 }
   0x2   :  { %9 = vsyncpa [#allocation4], 0  ;;  %s820_s9 = smov [#allocation2]  }
   0x3   :  { %s15_s10 = sshll.u32 %s820_s9, 4  ;;  %s16_s10 = int_to_ptr.vmem [resolvable:$true] %s15_s10 }
   0x4   :  { %s762_s11 = scalar_lea.vmem %s16_s10, 4096  ;;  %p767_p1 = scmp.lt.s32.totalorder %s16_s10, %s16_s10 }
   0x5   :  { %p763_p0 = scmp.ne.s32.totalorder %s16_s10, %s762_s11  ;;  %p768_p2 = scmp.lt.s32.totalorder %s762_s11, %s762_s11 }
   0x7   :  { %p769_p3 = por %p768_p2, %p767_p1 }
   0x9   :  { %p770_p4 = pnand %p769_p3, %p763_p0 }
   0xb   :  { %773 = shalt.err (!%p770_p4)
}
   0xc   :  { %s821_s12 = smov 2048   ;;  %s822_s13 = smov 128  }
   0xd   :  { %21 = dma.hbm_to_vmem [thread:$0]  %s999_s0, 4096, %s16_s10, [#allocation3], %s821_s12, %s821_s12, %s822_s13  }
   0xe   :  { %s823_s16 = smov [#allocation5]  }
   0xf   :  { %s27_s17 = sshll.u32 %s823_s16, 4  ;;  %s28_s17 = int_to_ptr.vmem [resolvable:$true] %s27_s17 }
  0x10   :  { %s782_s18 = scalar_lea.vmem %s28_s17, 4096  ;;  %p787_p6 = scmp.lt.s32.totalorder %s28_s17, %s28_s17 }
  0x11   :  { %p783_p5 = scmp.ne.s32.totalorder %s28_s17, %s782_s18  ;;  %p788_p7 = scmp.lt.s32.totalorder %s782_s18, %s782_s18 }
  0x13   :  { %p789_p8 = por %p788_p7, %p787_p6 }
  0x15   :  { %p790_p9 = pnand %p789_p8, %p783_p5 }
  0x17   :  { %793 = shalt.err (!%p790_p9)
}
  0x18   :  { %33 = dma.hbm_to_vmem [thread:$0]  %s1000_s1, 4096, %s28_s17, [#allocation6], %s821_s12, %s821_s12, %s822_s13  }
  0x19   :  { %814 = dma.done.wait [#allocation3], 4096  }
  0x1a   :  { %815 = vsyncadd [#allocation3], 4294963200 }
  0x1b   :  { %816 = dma.done.wait [#allocation6], 4096  }
  0x1c   :  { %817 = vsyncadd [#allocation6], 4294963200  ;;  %v40_v0 = vld [vmem:[#allocation5] sm:$0xff]  ;;  %v41_v1 = vld [vmem:[#allocation5 + $0x8] sm:$0xff]  ;;  %vm377_vm0 = vcmask 1041408   ;;  %vm550_vm1 = vcmask 1043456  }
  0x1d   :  { %v42_v2 = vld [vmem:[#allocation5 + $0x10] sm:$0xff]  ;;  %v43_v3 = vld [vmem:[#allocation5 + $0x18] sm:$0xff]  ;;  %v104_v4 = vmax.f32 %v40_v0, 1e-09  ;;  %v44_v5 = vld [vmem:[#allocation5 + $0x20] sm:$0xff]  ;;  %vm551_vm2 = vcmask 662532  }
  0x1e   :  { %v105_v6 = vmax.f32 %v41_v1, 1e-09  ;;  %v45_v7 = vld [vmem:[#allocation5 + $0x28] sm:$0xff]  ;;  %v106_v8 = vmax.f32 %v42_v2, 1e-09  ;;  %v46_v9 = vld [vmem:[#allocation5 + $0x30] sm:$0xff]  ;;  %vm552_vm3 = vmor %vm551_vm2, %vm550_vm1 }
  0x1f   :  { %622 = vlog2.f32 %v104_v4  ;;  %v107_v10 = vmax.f32 %v43_v3, 1e-09  ;;  %v47_v11 = vld [vmem:[#allocation5 + $0x38] sm:$0xff]  ;;  %v108_v12 = vmax.f32 %v44_v5, 1e-09  ;;  %v48_v13 = vld [vmem:[#allocation5 + $0x40] sm:$0xff] }
  0x20   :  { %624 = vlog2.f32 %v105_v6  ;;  %v109_v14 = vmax.f32 %v45_v7, 1e-09  ;;  %v49_v15 = vld [vmem:[#allocation5 + $0x48] sm:$0xff]  ;;  %v50_v16 = vld [vmem:[#allocation5 + $0x50] sm:$0xff]  ;;  %v110_v17 = vmax.f32 %v46_v9, 1e-09 }
  0x21   :  { %626 = vlog2.f32 %v106_v8  ;;  %v51_v18 = vld [vmem:[#allocation5 + $0x58] sm:$0xff]  ;;  %v52_v19 = vld [vmem:[#allocation5 + $0x60] sm:$0xff]  ;;  %v111_v20 = vmax.f32 %v47_v11, 1e-09  ;;  %v53_v21 = vld [vmem:[#allocation5 + $0x68] sm:$0xff]  ;;  %vm561_vm4 = vcmask 1040384  }
  0x22   :  { %628 = vlog2.f32 %v107_v10  ;;  %v112_v22 = vmax.f32 %v48_v13, 1e-09  ;;  %v54_v23 = vld [vmem:[#allocation5 + $0x70] sm:$0xff]  ;;  %v113_v24 = vmax.f32 %v49_v15, 1e-09  ;;  %v55_v26 = vld [vmem:[#allocation5 + $0x78] sm:$0xff] }
  0x23   :  { %630 = vlog2.f32 %v108_v12  ;;  %v114_v25 = vmax.f32 %v50_v16, 1e-09  ;;  %v115_v27 = vmax.f32 %v51_v18, 1e-09  ;;  %v116_v28 = vmax.f32 %v52_v19, 1e-09 }
  0x24   :  { %632 = vlog2.f32 %v109_v14  ;;  %v117_v29 = vmax.f32 %v53_v21, 1e-09  ;;  %v118_v30 = vmax.f32 %v54_v23, 1e-09  ;;  %v119_v31 = vmax.f32 %v55_v26, 1e-09 }
  0x25   :  { %634 = vlog2.f32 %v110_v17  ;;  %v72_v23 = vld [vmem:[#allocation2] sm:$0xff]  ;;  %v73_v26 = vld [vmem:[#allocation2 + $0x8] sm:$0xff]  ;;  %vm562_vm5 = vcmask 659460   ;;  %s824_s0 = smov [#allocation7]  }
  0x26   :  { %636 = vlog2.f32 %v111_v20  ;;  %s570_s1 = sshll.u32 %s824_s0, 4  ;;  %vm563_vm6 = vmor %vm562_vm5, %vm561_vm4  ;;  %s571_s1 = int_to_ptr.vmem [resolvable:$true] %s570_s1 }
  0x27   :  { %638 = vlog2.f32 %v112_v22  ;;  %s794_s21 = scalar_lea.vmem %s571_s1, 2048  ;;  %p799_p11 = scmp.lt.s32.totalorder %s571_s1, %s571_s1 }
  0x28   :  { %640 = vlog2.f32 %v113_v24  ;;  %p795_p10 = scmp.ne.s32.totalorder %s571_s1, %s794_s21  ;;  %p800_p12 = scmp.lt.s32.totalorder %s794_s21, %s794_s21 }
  0x29   :  { %642 = vlog2.f32 %v114_v25 }
  0x2a   :  { %644 = vlog2.f32 %v115_v27  ;;  %p801_p13 = por %p800_p12, %p799_p11 }
  0x2b   :  { %646 = vlog2.f32 %v116_v28 }
  0x2c   :  { %v623_v32 = vpop.eup %622  ;;  %648 = vlog2.f32 %v117_v29  ;;  %v74_v29 = vld [vmem:[#allocation2 + $0x10] sm:$0xff]  ;;  %p802_p0 = pnand %p801_p13, %p795_p10 }
  0x2d   :  { %v625_v33 = vpop.eup %624  ;;  %v137_v34 = vmul.f32 0.6931472, %v623_v32  ;;  %650 = vlog2.f32 %v118_v30 }
  0x2e   :  { %v627_v35 = vpop.eup %626  ;;  %v139_v36 = vmul.f32 0.6931472, %v625_v33  ;;  %652 = vlog2.f32 %v119_v31  ;;  %v75_v33 = vld [vmem:[#allocation2 + $0x18] sm:$0xff] }
  0x2f   :  { %v629_v37 = vpop.eup %628  ;;  %v141_v38 = vmul.f32 0.6931472, %v627_v35  ;;  %v200_v39 = vsub.f32 0.0, %v137_v34 }
  0x30   :  { %v631_v40 = vpop.eup %630  ;;  %v143_v41 = vmul.f32 0.6931472, %v629_v37  ;;  %v201_v42 = vsub.f32 0.0, %v139_v36 }
  0x31   :  { %v633_v43 = vpop.eup %632  ;;  %v145_v44 = vmul.f32 0.6931472, %v631_v40  ;;  %v202_v45 = vsub.f32 0.0, %v141_v38  ;;  %v232_v46 = vmax.f32 %v200_v39, 1e-07 }
  0x32   :  { %v635_v47 = vpop.eup %634  ;;  %v147_v48 = vmul.f32 0.6931472, %v633_v43  ;;  %v203_v49 = vsub.f32 0.0, %v143_v41  ;;  %v233_v50 = vmax.f32 %v201_v42, 1e-07  ;;  %v76_v41 = vld [vmem:[#allocation2 + $0x20] sm:$0xff] }
  0x33   :  { %v637_v51 = vpop.eup %636  ;;  %v149_v52 = vmul.f32 0.6931472, %v635_v47  ;;  %v204_v53 = vsub.f32 0.0, %v145_v44  ;;  %v234_v54 = vmax.f32 %v202_v45, 1e-07  ;;  %654 = vrcp.f32 %v232_v46 }
  0x34   :  { %v639_v55 = vpop.eup %638  ;;  %v151_v56 = vmul.f32 0.6931472, %v637_v51  ;;  %v205_v57 = vsub.f32 0.0, %v147_v48  ;;  %v235_v58 = vmax.f32 %v203_v49, 1e-07  ;;  %656 = vrcp.f32 %v233_v50  ;;  %v77_v51 = vld [vmem:[#allocation2 + $0x28] sm:$0xff] }
  0x35   :  { %v641_v59 = vpop.eup %640  ;;  %v153_v60 = vmul.f32 0.6931472, %v639_v55  ;;  %v206_v61 = vsub.f32 0.0, %v149_v52  ;;  %v236_v62 = vmax.f32 %v204_v53, 1e-07  ;;  %658 = vrcp.f32 %v234_v54 }
  0x36   :  { %v643_v63 = vpop.eup %642  ;;  %v155_v0 = vmul.f32 0.6931472, %v641_v59  ;;  %v207_v1 = vsub.f32 0.0, %v151_v56  ;;  %v237_v2 = vmax.f32 %v205_v57, 1e-07  ;;  %660 = vrcp.f32 %v235_v58  ;;  %v78_v59 = vld [vmem:[#allocation2 + $0x30] sm:$0xff] }
  0x37   :  { %v645_v3 = vpop.eup %644  ;;  %v157_v4 = vmul.f32 0.6931472, %v643_v63  ;;  %v208_v5 = vsub.f32 0.0, %v153_v60  ;;  %v238_v6 = vmax.f32 %v206_v61, 1e-07  ;;  %662 = vrcp.f32 %v236_v62 }
  0x38   :  { %v647_v7 = vpop.eup %646  ;;  %v159_v8 = vmul.f32 0.6931472, %v645_v3  ;;  %v209_v9 = vsub.f32 0.0, %v155_v0  ;;  %v239_v10 = vmax.f32 %v207_v1, 1e-07  ;;  %664 = vrcp.f32 %v237_v2  ;;  %v79_v3 = vld [vmem:[#allocation2 + $0x38] sm:$0xff] }
  0x39   :  { %v649_v11 = vpop.eup %648  ;;  %v161_v12 = vmul.f32 0.6931472, %v647_v7  ;;  %v210_v15 = vsub.f32 0.0, %v157_v4  ;;  %v240_v16 = vmax.f32 %v208_v5, 1e-07  ;;  %666 = vrcp.f32 %v238_v6 }
  0x3a   :  { %v651_v13 = vpop.eup %650  ;;  %v163_v14 = vmul.f32 0.6931472, %v649_v11  ;;  %v211_v20 = vsub.f32 0.0, %v159_v8  ;;  %v241_v21 = vmax.f32 %v209_v9, 1e-07  ;;  %668 = vrcp.f32 %v239_v10  ;;  %v80_v11 = vld [vmem:[#allocation2 + $0x40] sm:$0xff] }
  0x3b   :  { %v653_v17 = vpop.eup %652  ;;  %v165_v18 = vmul.f32 0.6931472, %v651_v13  ;;  %v212_v22 = vsub.f32 0.0, %v161_v12  ;;  %v242_v25 = vmax.f32 %v210_v15, 1e-07  ;;  %670 = vrcp.f32 %v240_v16 }
  0x3c   :  { %v167_v19 = vmul.f32 0.6931472, %v653_v17  ;;  %v213_v24 = vsub.f32 0.0, %v163_v14  ;;  %v243_v31 = vmax.f32 %v211_v20, 1e-07  ;;  %672 = vrcp.f32 %v241_v21 }
  0x3d   :  { %v214_v27 = vsub.f32 0.0, %v165_v18  ;;  %v244_v34 = vmax.f32 %v212_v22, 1e-07  ;;  %674 = vrcp.f32 %v242_v25  ;;  %v56_v39 = vld [vmem:[#allocation5 + $0x80] sm:$0x3] }
  0x3e   :  { %v215_v30 = vsub.f32 0.0, %v167_v19  ;;  %v245_v37 = vmax.f32 %v213_v24, 1e-07  ;;  %v57_v44 = vld [vmem:[#allocation5 + $0x88] sm:$0x3]  ;;  %676 = vrcp.f32 %v243_v31 }
  0x3f   :  { %v246_v42 = vmax.f32 %v214_v27, 1e-07  ;;  %v58_v49 = vld [vmem:[#allocation5 + $0x90] sm:$0x3]  ;;  %678 = vrcp.f32 %v244_v34  ;;  %v59_v52 = vld [vmem:[#allocation5 + $0x98] sm:$0x3] }
  0x40   :  { %v655_v28 = vpop.eup %654  ;;  %v247_v46 = vmax.f32 %v215_v30, 1e-07  ;;  %v120_v53 = vmax.f32 %v56_v39, 1e-09  ;;  %680 = vrcp.f32 %v245_v37  ;;  %v60_v56 = vld [vmem:[#allocation5 + $0xa0] sm:$0x3] }
  0x41   :  { %v657_v32 = vpop.eup %656  ;;  %v848_v35 = vmul.f32 %v655_v28, %v72_v23  ;;  %v121_v57 = vmax.f32 %v57_v44, 1e-09  ;;  %682 = vrcp.f32 %v246_v42  ;;  %v61_v60 = vld [vmem:[#allocation5 + $0xa8] sm:$0x3]  ;;  %v122_v61 = vmax.f32 %v58_v49, 1e-09 }
  0x42   :  { %v659_v36 = vpop.eup %658  ;;  %v850_v38 = vmul.f32 %v657_v32, %v73_v26  ;;  %684 = vrcp.f32 %v247_v46  ;;  %v62_v0 = vld [vmem:[#allocation5 + $0xb0] sm:$0x3]  ;;  %v123_v1 = vmax.f32 %v59_v52, 1e-09  ;;  %v63_v4 = vld [vmem:[#allocation5 + $0xb8] sm:$0x3] }
  0x43   :  { %v661_v40 = vpop.eup %660  ;;  %v852_v43 = vmul.f32 %v659_v36, %v74_v29  ;;  %v124_v5 = vmax.f32 %v60_v56, 1e-09  ;;  %686 = vlog2.f32 %v120_v53  ;;  %v64_v8 = vld [vmem:[#allocation5 + $0xc0] sm:$0x3]  ;;  %v125_v9 = vmax.f32 %v61_v60, 1e-09 }
  0x44   :  { %v663_v45 = vpop.eup %662  ;;  %v854_v47 = vmul.f32 %v661_v40, %v75_v33  ;;  %v360_v48 = vadd.f32 %v850_v38, %v848_v35  ;;  %688 = vlog2.f32 %v121_v57  ;;  %v65_v12 = vld [vmem:[#allocation5 + $0xc8] sm:$0x3]  ;;  %v126_v13 = vmax.f32 %v62_v0, 1e-09  ;;  %v66_v16 = vld [vmem:[#allocation5 + $0xd0] sm:$0x3] }
  0x45   :  { %v665_v50 = vpop.eup %664  ;;  %v858_v54 = vmul.f32 %v663_v45, %v76_v41  ;;  %690 = vlog2.f32 %v122_v61  ;;  %v127_v17 = vmax.f32 %v63_v4, 1e-09  ;;  %v81_v19 = vld [vmem:[#allocation2 + $0x48] sm:$0xff]  ;;  %v67_v20 = vld [vmem:[#allocation5 + $0xd8] sm:$0x3]  ;;  %v82_v27 = vld [vmem:[#allocation2 + $0x50] sm:$0xff] }
  0x46   :  { %v361_v55 = vadd.f32 %v360_v48, %v852_v43  ;;  %v667_v58 = vpop.eup %666  ;;  %v861_v62 = vmul.f32 %v665_v50, %v77_v51  ;;  %692 = vlog2.f32 %v123_v1  ;;  %v128_v21 = vmax.f32 %v64_v8, 1e-09  ;;  %v68_v24 = vld [vmem:[#allocation5 + $0xe0] sm:$0x3]  ;;  %v69_v28 = vld [vmem:[#allocation5 + $0xe8] sm:$0x3] }
  0x47   :  { %v669_v2 = vpop.eup %668  ;;  %v864_v6 = vmul.f32 %v667_v58, %v78_v59  ;;  %694 = vlog2.f32 %v124_v5  ;;  %v129_v25 = vmax.f32 %v65_v12, 1e-09  ;;  %v130_v29 = vmax.f32 %v66_v16, 1e-09  ;;  %v70_v32 = vld [vmem:[#allocation5 + $0xf0] sm:$0x3] }
  0x48   :  { %v362_v63 = vadd.f32 %v361_v55, %v854_v47  ;;  %v671_v10 = vpop.eup %670  ;;  %v867_v14 = vmul.f32 %v669_v2, %v79_v3  ;;  %696 = vlog2.f32 %v125_v9  ;;  %v131_v33 = vmax.f32 %v67_v20, 1e-09  ;;  %v83_v36 = vld [vmem:[#allocation2 + $0x58] sm:$0xff]  ;;  %v84_v46 = vld [vmem:[#allocation2 + $0x60] sm:$0xff]  ;;  %v85_v55 = vld [vmem:[#allocation2 + $0x68] sm:$0xff] }
  0x49   :  { %v673_v18 = vpop.eup %672  ;;  %v870_v22 = vmul.f32 %v671_v10, %v80_v11  ;;  %698 = vlog2.f32 %v126_v13  ;;  %v71_v37 = vld [vmem:[#allocation5 + $0xf8] sm:$0x3]  ;;  %v132_v39 = vmax.f32 %v68_v24, 1e-09  ;;  %v133_v44 = vmax.f32 %v69_v28, 1e-09 }
  0x4a   :  { %v363_v7 = vadd.f32 %v362_v63, %v858_v54  ;;  %v675_v26 = vpop.eup %674  ;;  %v873_v30 = vmul.f32 %v673_v18, %v81_v19  ;;  %700 = vlog2.f32 %v127_v17  ;;  %v134_v48 = vmax.f32 %v70_v32, 1e-09  ;;  %v86_v60 = vld [vmem:[#allocation2 + $0x70] sm:$0xff]  ;;  %v87_v0 = vld [vmem:[#allocation2 + $0x78] sm:$0xff] }
  0x4b   :  { %v677_v34 = vpop.eup %676  ;;  %702 = vlog2.f32 %v128_v21  ;;  %v876_v41 = vmul.f32 %v675_v26, %v82_v27  ;;  %v135_v52 = vmax.f32 %v71_v37, 1e-09 }
  0x4c   :  { %v364_v15 = vadd.f32 %v363_v7, %v861_v62  ;;  %v679_v40 = vpop.eup %678  ;;  %704 = vlog2.f32 %v129_v25  ;;  %v879_v50 = vmul.f32 %v677_v34, %v83_v36 }
  0x4d   :  { %v681_v45 = vpop.eup %680  ;;  %706 = vlog2.f32 %v130_v29  ;;  %v882_v57 = vmul.f32 %v679_v40, %v84_v46 }
  0x4e   :  { %v365_v23 = vadd.f32 %v364_v15, %v864_v6  ;;  %v683_v49 = vpop.eup %682  ;;  %708 = vlog2.f32 %v131_v33  ;;  %v885_v1 = vmul.f32 %v681_v45, %v85_v55 }
  0x4f   :  { %v685_v53 = vpop.eup %684  ;;  %710 = vlog2.f32 %v132_v39  ;;  %v888_v9 = vmul.f32 %v683_v49, %v86_v60 }
  0x50   :  { %v366_v31 = vadd.f32 %v365_v23, %v867_v14  ;;  %v687_v56 = vpop.eup %686  ;;  %712 = vlog2.f32 %v133_v44  ;;  %v891_v15 = vmul.f32 %v685_v53, %v87_v0 }
  0x51   :  { %v689_v59 = vpop.eup %688  ;;  %v169_v61 = vmul.f32 0.6931472, %v687_v56  ;;  %714 = vlog2.f32 %v134_v48 }
  0x52   :  { %v367_v42 = vadd.f32 %v366_v31, %v870_v22  ;;  %v691_v63 = vpop.eup %690  ;;  %v171_v3 = vmul.f32 0.6931472, %v689_v59  ;;  %716 = vlog2.f32 %v135_v52 }
  0x53   :  { %v693_v4 = vpop.eup %692  ;;  %v173_v5 = vmul.f32 0.6931472, %v691_v63  ;;  %v216_v7 = vsub.f32 0.0, %v169_v61 }
  0x54   :  { %v368_v51 = vadd.f32 %v367_v42, %v873_v30  ;;  %v695_v8 = vpop.eup %694  ;;  %v175_v11 = vmul.f32 0.6931472, %v693_v4  ;;  %v217_v12 = vsub.f32 0.0, %v171_v3 }
  0x55   :  { %v697_v13 = vpop.eup %696  ;;  %v177_v16 = vmul.f32 0.6931472, %v695_v8  ;;  %v218_v17 = vsub.f32 0.0, %v173_v5  ;;  %v248_v18 = vmax.f32 %v216_v7, 1e-07 }
  0x56   :  { %v369_v58 = vadd.f32 %v368_v51, %v876_v41  ;;  %v699_v19 = vpop.eup %698  ;;  %v179_v21 = vmul.f32 0.6931472, %v697_v13  ;;  %v219_v23 = vsub.f32 0.0, %v175_v11  ;;  %v249_v24 = vmax.f32 %v217_v12, 1e-07 }
  0x57   :  { %v701_v25 = vpop.eup %700  ;;  %v181_v26 = vmul.f32 0.6931472, %v699_v19  ;;  %v220_v27 = vsub.f32 0.0, %v177_v16  ;;  %v250_v28 = vmax.f32 %v218_v17, 1e-07  ;;  %718 = vrcp.f32 %v248_v18 }
  0x58   :  { %v370_v2 = vadd.f32 %v369_v58, %v879_v50  ;;  %v703_v29 = vpop.eup %702  ;;  %v183_v32 = vmul.f32 0.6931472, %v701_v25  ;;  %v221_v33 = vsub.f32 0.0, %v179_v21  ;;  %v251_v34 = vmax.f32 %v219_v23, 1e-07 }
  0x59   :  { %v705_v36 = vpop.eup %704  ;;  %v185_v37 = vmul.f32 0.6931472, %v703_v29  ;;  %v222_v39 = vsub.f32 0.0, %v181_v26  ;;  %v252_v40 = vmax.f32 %v220_v27, 1e-07  ;;  %720 = vrcp.f32 %v249_v24 }
  0x5a   :  { %v371_v10 = vadd.f32 %v370_v2, %v882_v57  ;;  %v707_v42 = vpop.eup %706  ;;  %v187_v45 = vmul.f32 0.6931472, %v705_v36  ;;  %v223_v46 = vsub.f32 0.0, %v183_v32  ;;  %v253_v48 = vmax.f32 %v221_v33, 1e-07 }
  0x5b   :  { %v709_v49 = vpop.eup %708  ;;  %v189_v51 = vmul.f32 0.6931472, %v707_v42  ;;  %v224_v52 = vsub.f32 0.0, %v185_v37  ;;  %v254_v53 = vmax.f32 %v222_v39, 1e-07  ;;  %722 = vrcp.f32 %v250_v28 }
  0x5c   :  { %v372_v20 = vadd.f32 %v371_v10, %v885_v1  ;;  %v711_v55 = vpop.eup %710  ;;  %v191_v56 = vmul.f32 0.6931472, %v709_v49  ;;  %v225_v58 = vsub.f32 0.0, %v187_v45  ;;  %v255_v59 = vmax.f32 %v223_v46, 1e-07 }
  0x5d   :  { %724 = vrcp.f32 %v251_v34  ;;  %v713_v60 = vpop.eup %712  ;;  %v193_v61 = vmul.f32 0.6931472, %v711_v55  ;;  %v226_v63 = vsub.f32 0.0, %v189_v51  ;;  %v256_v0 = vmax.f32 %v224_v52, 1e-07 }
  0x5e   :  { %v373_v31 = vadd.f32 %v372_v20, %v888_v9  ;;  %726 = vrcp.f32 %v252_v40  ;;  %v715_v2 = vpop.eup %714  ;;  %v195_v4 = vmul.f32 0.6931472, %v713_v60  ;;  %v227_v5 = vsub.f32 0.0, %v191_v56  ;;  %v88_v12 = vld [vmem:[#allocation2 + $0x80] sm:$0x3] }
  0x5f   :  { %728 = vrcp.f32 %v253_v48  ;;  %v717_v3 = vpop.eup %716  ;;  %v257_v7 = vmax.f32 %v225_v58, 1e-07  ;;  %v197_v8 = vmul.f32 0.6931472, %v715_v2  ;;  %v228_v10 = vsub.f32 0.0, %v193_v61 }
  0x60   :  { %v374_v44 = vadd.f32 %v373_v31, %v891_v15  ;;  %730 = vrcp.f32 %v254_v53  ;;  %v258_v11 = vmax.f32 %v226_v63, 1e-07  ;;  %v199_v13 = vmul.f32 0.6931472, %v717_v3  ;;  %v89_v19 = vld [vmem:[#allocation2 + $0x88] sm:$0x3] }
  0x61   :  { %732 = vrcp.f32 %v255_v59  ;;  %v229_v16 = vsub.f32 0.0, %v195_v4  ;;  %v259_v17 = vmax.f32 %v227_v5, 1e-07  ;;  %v230_v20 = vsub.f32 0.0, %v197_v8  ;;  %v90_v25 = vld [vmem:[#allocation2 + $0x90] sm:$0x3] }
  0x62   :  { %375 = vadd.xlane.f32.xlu0 %v374_v44  ;;  %734 = vrcp.f32 %v256_v0  ;;  %v260_v21 = vmax.f32 %v228_v10, 1e-07  ;;  %v231_v26 = vsub.f32 0.0, %v199_v13  ;;  %v91_v27 = vld [vmem:[#allocation2 + $0x98] sm:$0x3] }
  0x63   :  { %736 = vrcp.f32 %v257_v7  ;;  %v261_v28 = vmax.f32 %v229_v16, 1e-07  ;;  %v92_v33 = vld [vmem:[#allocation2 + $0xa0] sm:$0x3]  ;;  %v93_v36 = vld [vmem:[#allocation2 + $0xa8] sm:$0x3] }
  0x64   :  { %v719_v18 = vpop.eup %718  ;;  %738 = vrcp.f32 %v258_v11  ;;  %v262_v37 = vmax.f32 %v230_v20, 1e-07  ;;  %v94_v44 = vld [vmem:[#allocation2 + $0xb0] sm:$0x3]  ;;  %v263_v49 = vmax.f32 %v231_v26, 1e-07 }
  0x65   :  { %v896_v23 = vmul.f32 %v719_v18, %v88_v12  ;;  %740 = vrcp.f32 %v259_v17  ;;  %v95_v55 = vld [vmem:[#allocation2 + $0xb8] sm:$0x3]  ;;  %v96_v2 = vld [vmem:[#allocation2 + $0xc0] sm:$0x3]  ;;  %v97_v8 = vld [vmem:[#allocation2 + $0xc8] sm:$0x3] }
  0x66   :  { %v721_v24 = vpop.eup %720  ;;  %742 = vrcp.f32 %v260_v21  ;;  %v98_v16 = vld [vmem:[#allocation2 + $0xd0] sm:$0x3]  ;;  %v99_v21 = vld [vmem:[#allocation2 + $0xd8] sm:$0x3] }
  0x67   :  { %v898_v29 = vmul.f32 %v721_v24, %v89_v19  ;;  %v378_v31 = vsel %vm377_vm0, %v896_v23, 0.0  ;;  %744 = vrcp.f32 %v261_v28  ;;  %v100_v28 = vld [vmem:[#allocation2 + $0xe0] sm:$0x3] }
  0x68   :  { %v723_v32 = vpop.eup %722  ;;  %746 = vrcp.f32 %v262_v37 }
  0x69   :  { %v902_v39 = vmul.f32 %v723_v32, %v90_v25  ;;  %v379_v40 = vsel %vm377_vm0, %v898_v29, 0.0  ;;  %748 = vrcp.f32 %v263_v49 }
  0x6a   :  { %v725_v34 = vpop.eup %724  ;;  %v380_v46 = vadd.f32 %v379_v40, %v378_v31 }
  0x6b   :  { %v727_v42 = vpop.eup %726  ;;  %v906_v45 = vmul.f32 %v725_v34, %v91_v27  ;;  %v381_v52 = vsel %vm377_vm0, %v902_v39, 0.0 }
  0x6c   :  { %v729_v48 = vpop.eup %728  ;;  %v908_v51 = vmul.f32 %v727_v42, %v92_v33  ;;  %v382_v58 = vadd.f32 %v381_v52, %v380_v46  ;;  %v102_v46 = vld [vmem:[#allocation2 + $0xf0] sm:$0x3] }
  0x6d   :  { %v731_v53 = vpop.eup %730  ;;  %v912_v56 = vmul.f32 %v729_v48, %v93_v36  ;;  %v383_v59 = vsel %vm377_vm0, %v906_v45, 0.0  ;;  %v101_v36 = vld [vmem:[#allocation2 + $0xe8] sm:$0x3] }
  0x6e   :  { %v733_v60 = vpop.eup %732  ;;  %v916_v61 = vmul.f32 %v731_v53, %v94_v44  ;;  %v385_v63 = vsel %vm377_vm0, %v908_v51, 0.0  ;;  %v384_v3 = vadd.f32 %v383_v59, %v382_v58 }
  0x6f   :  { %v735_v0 = vpop.eup %734  ;;  %v920_v4 = vmul.f32 %v733_v60, %v95_v55  ;;  %v387_v5 = vsel %vm377_vm0, %v912_v56, 0.0  ;;  %v103_v55 = vld [vmem:[#allocation2 + $0xf8] sm:$0x3] }
  0x70   :  { %v737_v7 = vpop.eup %736  ;;  %v386_v10 = vadd.f32 %v385_v63, %v384_v3  ;;  %v924_v11 = vmul.f32 %v735_v0, %v96_v2  ;;  %v389_v12 = vsel %vm377_vm0, %v916_v61, 0.0 }
  0x71   :  { %v739_v13 = vpop.eup %738  ;;  %v928_v18 = vmul.f32 %v737_v7, %v97_v8  ;;  %v391_v19 = vsel %vm377_vm0, %v920_v4, 0.0 }
  0x72   :  { %v388_v17 = vadd.f32 %v387_v5, %v386_v10  ;;  %v741_v20 = vpop.eup %740  ;;  %v932_v25 = vmul.f32 %v739_v13, %v98_v16  ;;  %v393_v26 = vsel %vm377_vm0, %v924_v11, 0.0 }
  0x73   :  { %v743_v27 = vpop.eup %742  ;;  %v936_v32 = vmul.f32 %v741_v20, %v99_v21  ;;  %v395_v33 = vsel %vm377_vm0, %v928_v18, 0.0 }
  0x74   :  { %v390_v24 = vadd.f32 %v389_v12, %v388_v17  ;;  %v745_v34 = vpop.eup %744  ;;  %v940_v40 = vmul.f32 %v743_v27, %v100_v28  ;;  %v397_v42 = vsel %vm377_vm0, %v932_v25, 0.0 }
  0x75   :  { %v747_v44 = vpop.eup %746  ;;  %v944_v49 = vmul.f32 %v745_v34, %v101_v36  ;;  %v399_v52 = vsel %vm377_vm0, %v936_v32, 0.0 }
  0x76   :  { %v392_v31 = vadd.f32 %v391_v19, %v390_v24  ;;  %v749_v53 = vpop.eup %748  ;;  %v948_v59 = vmul.f32 %v747_v44, %v102_v46  ;;  %v401_v60 = vsel %vm377_vm0, %v940_v40, 0.0 }
  0x77   :  { %v952_v0 = vmul.f32 %v749_v53, %v103_v55  ;;  %v403_v2 = vsel %vm377_vm0, %v944_v49, 0.0 }
  0x78   :  { %v394_v37 = vadd.f32 %v393_v26, %v392_v31  ;;  %v405_v5 = vsel %vm377_vm0, %v948_v59, 0.0 }
  0x79   :  { %v407_v8 = vsel %vm377_vm0, %v952_v0, 0.0 }
  0x7a   :  { %v396_v48 = vadd.f32 %v395_v33, %v394_v37 }
  0x7c   :  { %v398_v58 = vadd.f32 %v397_v42, %v396_v48 }
  0x7e   :  { %v400_v63 = vadd.f32 %v399_v52, %v398_v58 }
  0x80   :  { %v402_v3 = vadd.f32 %v401_v60, %v400_v63 }
  0x82   :  { %v404_v7 = vadd.f32 %v403_v2, %v402_v3 }
  0x84   :  { %v406_v10 = vadd.f32 %v405_v5, %v404_v7 }
  0x86   :  { %v408_v12 = vadd.f32 %v407_v8, %v406_v10 }
  0x88   :  { %409 = vadd.xlane.f32.xlu0 %v408_v12 }
  0xeb   :  { %v376_v13 = vpop.xlane.xlu0 %375 }
  0xec   :  { %750 = vrcp.f32 %v376_v13 }
  0xf9   :  { %v751_v16 = vpop.eup %750 }
  0xfa   :  { %v415_v17 = vmul.f32 %v751_v16, %v848_v35  ;;  %v416_v19 = vmul.f32 %v751_v16, %v850_v38  ;;  %v417_v20 = vmul.f32 %v751_v16, %v852_v43  ;;  %v418_v21 = vmul.f32 %v751_v16, %v854_v47 }
  0xfb   :  { %v419_v24 = vmul.f32 %v751_v16, %v858_v54  ;;  %v420_v26 = vmul.f32 %v751_v16, %v861_v62  ;;  %v421_v27 = vmul.f32 %v751_v16, %v864_v6  ;;  %v422_v28 = vmul.f32 %v751_v16, %v867_v14 }
  0xfc   :  { %v423_v31 = vmul.f32 %v751_v16, %v870_v22  ;;  %v424_v33 = vmul.f32 %v751_v16, %v873_v30  ;;  %v425_v35 = vmul.f32 %v751_v16, %v876_v41  ;;  %v426_v38 = vmul.f32 %v751_v16, %v879_v50 }
  0xfd   :  { %v427_v43 = vmul.f32 %v751_v16, %v882_v57  ;;  %v428_v47 = vmul.f32 %v751_v16, %v885_v1  ;;  %v429_v54 = vmul.f32 %v751_v16, %v888_v9  ;;  %v430_v62 = vmul.f32 %v751_v16, %v891_v15 }
  0xfe   :  { %v599_v34 = vpack.c.bf16 %v416_v19, %v415_v17  ;;  %v600_v6 = vpack.c.bf16 %v418_v21, %v417_v20  ;;  %v601_v36 = vpack.c.bf16 %v420_v26, %v419_v24  ;;  %v602_v14 = vpack.c.bf16 %v422_v28, %v421_v27 }
  0xff   :  { %v603_v22 = vpack.c.bf16 %v424_v33, %v423_v31  ;;  %v604_v30 = vpack.c.bf16 %v426_v38, %v425_v35  ;;  %v605_v41 = vpack.c.bf16 %v428_v47, %v427_v43  ;;  %v606_v37 = vpack.c.bf16 %v430_v62, %v429_v54 }
 0x100   :  { %543 = vst [vmem:[#allocation7] sm:$0xff] %v599_v34  ;;  %544 = vst [vmem:[#allocation7 + $0x8] sm:$0xff] %v600_v6 }
 0x101   :  { %545 = vst [vmem:[#allocation7 + $0x10] sm:$0xff] %v601_v36  ;;  %546 = vst [vmem:[#allocation7 + $0x18] sm:$0xff] %v602_v14 }
 0x102   :  { %547 = vst [vmem:[#allocation7 + $0x20] sm:$0xff] %v603_v22  ;;  %548 = vst [vmem:[#allocation7 + $0x28] sm:$0xff] %v604_v30 }
 0x103   :  { %549 = vst [vmem:[#allocation7 + $0x30] sm:$0xff] %v605_v41  ;;  %553 = vst.msk [vmem:[#allocation7 + $0x38] sm:$0xff] %vm552_vm3, %v606_v37 }
 0x111   :  { %v410_v50 = vpop.xlane.xlu0 %409 }
 0x112   :  { %752 = vrcp.f32 %v410_v50 }
 0x11f   :  { %v753_v57 = vpop.eup %752 }
 0x120   :  { %v431_v1 = vmul.f32 %v753_v57, %v896_v23  ;;  %v432_v9 = vmul.f32 %v753_v57, %v898_v29  ;;  %v433_v15 = vmul.f32 %v753_v57, %v902_v39  ;;  %v434_v42 = vmul.f32 %v753_v57, %v906_v45 }
 0x121   :  { %v435_v44 = vmul.f32 %v753_v57, %v908_v51  ;;  %v436_v46 = vmul.f32 %v753_v57, %v912_v56  ;;  %v437_v48 = vmul.f32 %v753_v57, %v916_v61  ;;  %v438_v52 = vmul.f32 %v753_v57, %v920_v4 }
 0x122   :  { %v439_v53 = vmul.f32 %v753_v57, %v924_v11  ;;  %v440_v23 = vmul.f32 %v753_v57, %v928_v18  ;;  %v441_v29 = vmul.f32 %v753_v57, %v932_v25  ;;  %v442_v39 = vmul.f32 %v753_v57, %v936_v32 }
 0x123   :  { %v443_v45 = vmul.f32 %v753_v57, %v940_v40  ;;  %v444_v51 = vmul.f32 %v753_v57, %v944_v49  ;;  %v445_v56 = vmul.f32 %v753_v57, %v948_v59  ;;  %v446_v61 = vmul.f32 %v753_v57, %v952_v0 }
 0x124   :  { %v607_v55 = vpack.c.bf16 %v432_v9, %v431_v1  ;;  %v608_v4 = vpack.c.bf16 %v434_v42, %v433_v15  ;;  %v609_v58 = vpack.c.bf16 %v436_v46, %v435_v44  ;;  %v610_v60 = vpack.c.bf16 %v438_v52, %v437_v48 }
 0x125   :  { %v611_v11 = vpack.c.bf16 %v440_v23, %v439_v53  ;;  %v612_v18 = vpack.c.bf16 %v442_v39, %v441_v29  ;;  %v613_v25 = vpack.c.bf16 %v444_v51, %v443_v45  ;;  %v614_v32 = vpack.c.bf16 %v446_v61, %v445_v56 }
 0x126   :  { %554 = vst [vmem:[#allocation7 + $0x40] sm:$0x11] %v607_v55  ;;  %555 = vst [vmem:[#allocation7 + $0x48] sm:$0x11] %v608_v4 }
 0x127   :  { %556 = vst [vmem:[#allocation7 + $0x50] sm:$0x11] %v609_v58  ;;  %557 = vst [vmem:[#allocation7 + $0x58] sm:$0x11] %v610_v60 }
 0x128   :  { %558 = vst [vmem:[#allocation7 + $0x60] sm:$0x11] %v611_v11  ;;  %559 = vst [vmem:[#allocation7 + $0x68] sm:$0x11] %v612_v18 }
 0x129   :  { %560 = vst [vmem:[#allocation7 + $0x70] sm:$0x11] %v613_v25  ;;  %564 = vst.msk [vmem:[#allocation7 + $0x78] sm:$0x11] %vm563_vm6, %v614_v32 }
 0x12a   :  { %805 = shalt.err (!%p802_p0)
}
 0x12b   :  { %s825_s22 = smov 1024   ;;  %s826_s23 = smov 64  }
 0x12c   :  { %576 = dma.vmem_to_hbm [thread:$0]  %s571_s1, 2048, %s1001_s2, [#allocation4], %s825_s22, %s825_s22, %s826_s23  }
 0x12d   :  { %818 = dma.done.wait [#allocation4], 2048  }
 0x12e   :  { %819 = vsyncadd [#allocation4], 4294965248 }
 0x12f   :  { %580 = vsyncpa [#allocation3], 1 }
 0x130   :  { %581 = vsyncpa [#allocation6], 1 }
 0x131   :  { %582 = vsyncpa [#allocation4], 1 }

</bundles_post_ra>
